<compile_context>
chip_gen: v6e
topology: v6e:2x2x1
jax: 0.10.0
libtpu: 0.0.40
codegen_flags: <defaults>
</compile_context>

<pallas_src>
import functools

import jax
import jax.numpy as jnp
from jax.experimental import pallas as pl
from jax.experimental.pallas import tpu as pltpu


def _round_up(x, m):
    return (x + m - 1) // m * m


def _is_v7x():
    try:
        return "v7" in jax.devices()[0].device_kind.lower()
    except Exception:
        return False


def _pick_tile_b(b, emb_dim, itemsize, v7x, stream_budget_bytes=8 * 1024 * 1024):
    """Pick a bandwidth-friendly batch tile (multiple of 8).  Does NOT require the
    tile to divide the batch -- the wrapper pads B up to a tile multiple and the
    kernel masks padded rows.  The double-buffered X stream (2 * tile * E * itemsize)
    stays inside a budget that is safe on v5e/v6e (128 MiB VMEM) and v7x (64 MiB)."""
    cap = stream_budget_bytes // (2 * emb_dim * itemsize)
    cap = max(8, min(1024, (cap // 8) * 8))
    tile = min(cap, _round_up(b, 8))
    tile = max(8, (tile // 8) * 8)
    if v7x and b >= 16:
        # v7x has 2 TensorCores: make sure the "parallel" grid has >= 2 blocks.
        while tile > 8 and _round_up(b, tile) // tile < 2:
            tile = max(8, ((tile // 2) // 8) * 8)
    return tile


def _proxy_nca_kernel(x_ref, t_ref, p_ref, pp_ref, o_ref, *,
                      nb_classes, smoothing, scaling_x, eps, batch,
                      tile_b, needs_row_mask):
    i = pl.program_id(0)

    x = x_ref[...]                             # (tile_b, E)  streaming dtype (f32/bf16)
    labels = t_ref[...]                        # (tile_b, 1)  int32
    pt = p_ref[...]                            # (E, C_pad)   pre-normalized * scaling_p
    pp = pp_ref[...]                           # (1, C_pad)   f32, squared row norms of P

    # |X|^2 per row, accumulated in f32 (eps^2 = 1e-24 would underflow in bf16).
    xf = x.astype(jnp.float32)
    xsq = jnp.sum(xf * xf, axis=-1, keepdims=True)                   # (tile_b, 1)

    # MXU matmul in the streaming dtype (bf16 operands -> native MXU path).
    raw = jnp.dot(x, pt, preferred_element_type=jnp.float32)         # (tile_b, C_pad)

    # D = |Xn|^2 + |P|^2 - 2 Xn.P  with  Xn = X * rsqrt(max(|X|^2, eps^2)) * scaling_x.
    # The |Xn|^2 term is constant per row and cancels in log_softmax(-D), so:
    #   logits = 2*scale*raw - |P|^2      (scale folded AFTER the matmul)
    s = jax.lax.rsqrt(jnp.maximum(xsq, jnp.float32(eps * eps))) \
        * jnp.float32(2.0 * scaling_x)                               # (tile_b, 1)

    c_pad = raw.shape[-1]
    cls = jax.lax.broadcasted_iota(jnp.int32, (tile_b, c_pad), 1)
    valid_c = cls < nb_classes
    logits = jnp.where(valid_c, s * raw - pp, jnp.float32(-1e30))

    # Masked log_softmax over the class axis.
    m = jnp.max(logits, axis=-1, keepdims=True)
    lse = m + jnp.log(jnp.sum(jnp.exp(logits - m), axis=-1, keepdims=True))
    logsm = logits - lse

    # Smoothed one-hot targets (== binarize_and_smooth_labels).
    on_val = jnp.float32(1.0 - smoothing)
    off_val = jnp.float32(smoothing / (nb_classes - 1))
    tsm = jnp.where(cls == labels, on_val, off_val)
    tsm = jnp.where(valid_c, tsm, jnp.float32(0.0))

    contrib = -tsm * logsm                                            # (tile_b, C_pad)

    if needs_row_mask:  # only generated when the batch was padded to a tile multiple
        row = i * tile_b + jax.lax.broadcasted_iota(jnp.int32, (tile_b, c_pad), 0)
        contrib = jnp.where(row < batch, contrib, jnp.float32(0.0))

    # Lane-dense (8, C_pad) partial sum for this block -> full-vreg, unmasked store.
    o_ref[...] = jnp.sum(contrib.reshape(tile_b // 8, 8, c_pad), axis=0)


def proxy_nca_loss(x, t, proxies, *, smoothing_const=0.1, scaling_x=1.0,
                   scaling_p=3.0, eps=1e-12, tile_b=None):
    """Pallas TPU ProxyNCA forward.  x: (B, E) embeddings (f32 or bf16),
    t: (B,) int labels, proxies: (C, E) frozen proxy matrix.  Returns scalar mean loss."""
    b, e = x.shape
    c, e2 = proxies.shape
    assert e == e2 and c >= 2

    stream_dtype = x.dtype   # accept caller's bf16 embeddings to halve the X stream

    # One-time prep of the constant (requires_grad=False) proxies: normalize in f32,
    # scale, pad the class axis to a lane-dense 128, pre-transpose to canonical (K, N).
    pf = proxies.astype(jnp.float32)
    pf = pf * (scaling_p / jnp.maximum(
        jnp.sqrt(jnp.sum(pf * pf, axis=-1, keepdims=True)), eps))
    c_pad = _round_up(c, 128)
    if c_pad != c:
        pf = jnp.pad(pf, ((0, c_pad - c), (0, 0)))
    pp = jnp.sum(pf * pf, axis=-1)[None, :]                      # (1, C_pad) f32
    pf_t = pf.T.astype(stream_dtype)                             # (E, C_pad) resident RHS

    # Tile the batch; pad B up to a multiple of the tile (masked in-kernel).
    if tile_b is None:
        tile_b = _pick_tile_b(b, e, jnp.dtype(stream_dtype).itemsize, _is_v7x())
    assert tile_b % 8 == 0
    b_pad = _round_up(b, tile_b)
    t32 = t.astype(jnp.int32)
    if b_pad != b:
        x = jnp.pad(x, ((0, b_pad - b), (0, 0)))
        t32 = jnp.pad(t32, (0, b_pad - b))
    t32 = t32.reshape(b_pad, 1)
    num_blocks = b_pad // tile_b

    kernel = functools.partial(
        _proxy_nca_kernel,
        nb_classes=c, smoothing=float(smoothing_const),
        scaling_x=float(scaling_x), eps=float(eps), batch=b,
        tile_b=tile_b, needs_row_mask=(b_pad != b))

    partials = pl.pallas_call(
        kernel,
        out_shape=jax.ShapeDtypeStruct((num_blocks * 8, c_pad), jnp.float32),
        grid_spec=pltpu.PrefetchScalarGridSpec(
            num_scalar_prefetch=0,
            grid=(num_blocks,),
            in_specs=[
                # X batch tile (the only big stream; add pipeline_mode=pl.Buffered(3)
                # here if profiling on v5e shows exposed DMA).
                pl.BlockSpec((tile_b, e), lambda i: (i, 0)),
                pl.BlockSpec((tile_b, 1), lambda i: (i, 0)),     # labels
                pl.BlockSpec((e, c_pad), lambda i: (0, 0)),      # proxies^T (resident)
                pl.BlockSpec((1, c_pad), lambda i: (0, 0)),      # |P|^2 row
            ],
            out_specs=pl.BlockSpec((8, c_pad), lambda i: (i, 0)),
        ),
        compiler_params=pltpu.CompilerParams(
            dimension_semantics=("parallel",),
            vmem_limit_bytes=32 * 1024 * 1024),
    )(x, t32, pf_t, pp)

    return jnp.sum(partials) / jnp.float32(b)


def _reference(x, t, proxies, smoothing_const=0.1, scaling_x=1.0, scaling_p=3.0):
    eps = 1e-12
    p = proxies / jnp.maximum(
        jnp.linalg.norm(proxies, axis=-1, keepdims=True), eps) * scaling_p
    xn = x / jnp.maximum(
        jnp.linalg.norm(x, axis=-1, keepdims=True), eps) * scaling_x
    d = jnp.sum((xn[:, None, :] - p[None, :, :]) ** 2, axis=-1)   # cdist(X, P)**2
    logsm = jax.nn.log_softmax(-d, axis=-1)
    c = p.shape[0]
    onehot = jnp.arange(c, dtype=jnp.int32)[None, :] == t[:, None].astype(jnp.int32)
    tsm = jnp.where(onehot, 1.0 - smoothing_const, smoothing_const / (c - 1))
    return jnp.mean(jnp.sum(-tsm * logsm, axis=-1))


if __name__ == "__main__":
    # The module hardcodes 768-d embeddings and 40 proxies (generate_orth(768, 40)).
    B, E, C = 8, 768, 40
    key = jax.random.PRNGKey(0)
    kx, kp, kt = jax.random.split(key, 3)

    x = jax.random.normal(kx, (B, E), dtype=jnp.float32)
    # generate_orth: QR of a random (E, C) matrix, transposed -> (C, E) proxies.
    rand_mat = jax.random.uniform(kp, (E, C), dtype=jnp.float32)
    q, _ = jnp.linalg.qr(rand_mat)
    proxies = q.T
    labels = jax.random.randint(kt, (B,), 0, C, dtype=jnp.int32)

    # f32 streaming path.
    loss = proxy_nca_loss(x, labels, proxies,
                          smoothing_const=0.1, scaling_x=1.0, scaling_p=3.0)
    loss = jax.block_until_ready(loss)
    ref = _reference(x, labels, proxies)
    assert jnp.allclose(loss, ref, atol=1e-3, rtol=1e-3), (loss, ref)

    # bf16 streaming path with a ragged batch (exercises bf16 MXU + row masking).
    B2 = 10
    x2 = jax.random.normal(jax.random.PRNGKey(1), (B2, E), dtype=jnp.float32)
    t2 = jax.random.randint(jax.random.PRNGKey(2), (B2,), 0, C, dtype=jnp.int32)
    loss2 = proxy_nca_loss(x2.astype(jnp.bfloat16), t2, proxies)
    loss2 = jax.block_until_ready(loss2)
    ref2 = _reference(x2, t2, proxies)
    assert jnp.allclose(loss2, ref2, atol=3e-2, rtol=3e-2), (loss2, ref2)

    print("KERNEL_OK")
</pallas_src>

<mosaic_0001>
module attributes {stable_mosaic.version = 11 : i64} {
  func.func @_proxy_nca_kernel(%arg0: i32, %arg1: memref<8x768xf32, #tpu.memory_space<vmem>>, %arg2: memref<8x1xi32, #tpu.memory_space<vmem>>, %arg3: memref<768x128xf32, #tpu.memory_space<vmem>>, %arg4: memref<1x128xf32, #tpu.memory_space<vmem>>, %arg5: memref<8x128xf32, #tpu.memory_space<vmem>>) attributes {dimension_semantics = [#tpu.dimension_semantics<parallel>], iteration_bounds = array<i64: 1>, scalar_prefetch = 0 : i64, scratch_operands = 0 : i64, tpu.core_type = #tpu.core_type<tc>, window_params = [{transform_indices = @transform_0, window_bounds = array<i64: 8, 768>}, {transform_indices = @transform_1, window_bounds = array<i64: 8, 1>}, {pipeline_mode = #tpu.pipeline_mode<synchronous>, transform_indices = @transform_2, window_bounds = array<i64: 768, 128>}, {pipeline_mode = #tpu.pipeline_mode<synchronous>, transform_indices = @transform_3, window_bounds = array<i64: 1, 128>}, {transform_indices = @transform_4, window_bounds = array<i64: 8, 128>}]} {
    %c0 = arith.constant 0 : index
    %c0_0 = arith.constant 0 : index
    %0 = vector.load %arg1[%c0, %c0_0] : memref<8x768xf32, #tpu.memory_space<vmem>>, vector<8x768xf32>
    %c0_1 = arith.constant 0 : index
    %c0_2 = arith.constant 0 : index
    %1 = vector.load %arg2[%c0_1, %c0_2] : memref<8x1xi32, #tpu.memory_space<vmem>>, vector<8x1xi32>
    %c0_3 = arith.constant 0 : index
    %c0_4 = arith.constant 0 : index
    %2 = vector.load %arg3[%c0_3, %c0_4] : memref<768x128xf32, #tpu.memory_space<vmem>>, vector<768x128xf32>
    %c0_5 = arith.constant 0 : index
    %c0_6 = arith.constant 0 : index
    %3 = vector.load %arg4[%c0_5, %c0_6] : memref<1x128xf32, #tpu.memory_space<vmem>>, vector<1x128xf32>
    %4 = arith.mulf %0, %0 : vector<8x768xf32>
    %cst = arith.constant dense<0.000000e+00> : vector<8xf32>
    %5 = vector.multi_reduction <add>, %4, %cst [1] : vector<8x768xf32> to vector<8xf32>
    %6 = vector.shape_cast %5 : vector<8xf32> to vector<8x1xf32>
    %cst_7 = arith.constant dense<0.000000e+00> : vector<8x128xf32>
    %7 = tpu.matmul %0, %2, %cst_7 {dimension_numbers = #tpu.dot_dimension_numbers<[1], [0], [0], [1], [0, 0, 1, 1], [], []>} : vector<8x768xf32>, vector<768x128xf32>, vector<8x128xf32> -> vector<8x128xf32>
    %cst_8 = arith.constant 1.000000e-24 : f32
    %8 = vector.broadcast %cst_8 : f32 to vector<8x1xf32>
    %9 = arith.maximumf %6, %8 : vector<8x1xf32>
    %10 = math.rsqrt %9 : vector<8x1xf32>
    %cst_9 = arith.constant 2.000000e+00 : f32
    %11 = vector.broadcast %cst_9 : f32 to vector<8x1xf32>
    %12 = arith.mulf %10, %11 : vector<8x1xf32>
    %13 = tpu.iota {dimensions = array<i32: 1>} : vector<8x128xi32>
    %c40_i32 = arith.constant 40 : i32
    %14 = vector.broadcast %c40_i32 : i32 to vector<8x128xi32>
    %15 = arith.cmpi slt, %13, %14 : vector<8x128xi32>
    %16 = vector.broadcast %12 : vector<8x1xf32> to vector<8x128xf32>
    %17 = arith.mulf %16, %7 : vector<8x128xf32>
    %18 = vector.broadcast %3 : vector<1x128xf32> to vector<8x128xf32>
    %19 = arith.subf %17, %18 : vector<8x128xf32>
    %cst_10 = arith.constant -1.000000e+30 : f32
    %20 = vector.broadcast %cst_10 : f32 to vector<8x128xf32>
    %21 = arith.select %15, %19, %20 : vector<8x128xi1>, vector<8x128xf32>
    %cst_11 = arith.constant dense<0xFF800000> : vector<8xf32>
    %22 = vector.multi_reduction <maximumf>, %21, %cst_11 [1] : vector<8x128xf32> to vector<8xf32>
    %23 = vector.shape_cast %22 : vector<8xf32> to vector<8x1xf32>
    %24 = vector.broadcast %23 : vector<8x1xf32> to vector<8x128xf32>
    %25 = arith.subf %21, %24 : vector<8x128xf32>
    %26 = math.exp %25 : vector<8x128xf32>
    %cst_12 = arith.constant dense<0.000000e+00> : vector<8xf32>
    %27 = vector.multi_reduction <add>, %26, %cst_12 [1] : vector<8x128xf32> to vector<8xf32>
    %28 = vector.shape_cast %27 : vector<8xf32> to vector<8x1xf32>
    %29 = math.log %28 : vector<8x1xf32>
    %30 = arith.addf %23, %29 : vector<8x1xf32>
    %31 = vector.broadcast %30 : vector<8x1xf32> to vector<8x128xf32>
    %32 = arith.subf %21, %31 : vector<8x128xf32>
    %33 = vector.broadcast %1 : vector<8x1xi32> to vector<8x128xi32>
    %34 = arith.cmpi eq, %13, %33 : vector<8x128xi32>
    %cst_13 = arith.constant 0.899999976 : f32
    %cst_14 = arith.constant 0.00256410264 : f32
    %35 = vector.broadcast %cst_13 : f32 to vector<8x128xf32>
    %36 = vector.broadcast %cst_14 : f32 to vector<8x128xf32>
    %37 = arith.select %34, %35, %36 : vector<8x128xi1>, vector<8x128xf32>
    %cst_15 = arith.constant 0.000000e+00 : f32
    %38 = vector.broadcast %cst_15 : f32 to vector<8x128xf32>
    %39 = arith.select %15, %37, %38 : vector<8x128xi1>, vector<8x128xf32>
    %cst_16 = arith.constant 0.000000e+00 : f32
    %40 = vector.broadcast %cst_16 : f32 to vector<8x128xf32>
    %41 = arith.subf %40, %39 : vector<8x128xf32>
    %42 = arith.mulf %41, %32 : vector<8x128xf32>
    %43 = vector.shape_cast %42 : vector<8x128xf32> to vector<1x8x128xf32>
    %cst_17 = arith.constant dense<0.000000e+00> : vector<8x128xf32>
    %44 = vector.multi_reduction <add>, %43, %cst_17 [0] : vector<1x8x128xf32> to vector<8x128xf32>
    %c0_18 = arith.constant 0 : index
    %c0_19 = arith.constant 0 : index
    %45 = vector.load %arg5[%c0_18, %c0_19] : memref<8x128xf32, #tpu.memory_space<vmem>>, vector<8x128xf32>
    tpu.vector_store %arg5[%c0_18, %c0_19], %44 {strides = array<i32>} : memref<8x128xf32, #tpu.memory_space<vmem>>, vector<8x128xf32>,
    return
  }
  func.func @transform_0(%arg0: i32) -> (i32, i32) {
    %c0_i32 = arith.constant 0 : i32
    %c0_i32_0 = arith.constant 0 : i32
    return %arg0, %c0_i32 : i32, i32
  }
  func.func @transform_1(%arg0: i32) -> (i32, i32) {
    %c0_i32 = arith.constant 0 : i32
    %c0_i32_0 = arith.constant 0 : i32
    return %arg0, %c0_i32 : i32, i32
  }
  func.func @transform_2(%arg0: i32) -> (i32, i32) {
    %c0_i32 = arith.constant 0 : i32
    %c0_i32_0 = arith.constant 0 : i32
    %c0_i32_1 = arith.constant 0 : i32
    return %c0_i32, %c0_i32_0 : i32, i32
  }
  func.func @transform_3(%arg0: i32) -> (i32, i32) {
    %c0_i32 = arith.constant 0 : i32
    %c0_i32_0 = arith.constant 0 : i32
    %c0_i32_1 = arith.constant 0 : i32
    return %c0_i32, %c0_i32_0 : i32, i32
  }
  func.func @transform_4(%arg0: i32) -> (i32, i32) {
    %c0_i32 = arith.constant 0 : i32
    %c0_i32_0 = arith.constant 0 : i32
    return %arg0, %c0_i32 : i32, i32
  }
}

</mosaic_0001>

<bundles_post_ra>
// kernel: tpu_custom_call.1
= control target key start
LH: loop header
LB: loop body
LE: loop exit
PB: predicated region body
PF: predicated region fallthrough
CT: control target
= control target key end

     0   :  { %9 = vsyncpa [#allocation3], 0  ;;  %s664_s0 = inlined_call_operand.hbm [shape: f32[8,768], index: 0, kind: input, shape index: {}]   ;;  %s665_s1 = inlined_call_operand.vmem [shape: s32[8,1], index: 1, kind: input, shape index: {}]   ;;  %s666_s2 = inlined_call_operand.hbm [shape: f32[768,128], index: 2, kind: input, shape index: {}]   ;;  %s667_s3 = inlined_call_operand.vmem [shape: f32[1,128], index: 3, kind: input, shape index: {}]   ;;  %s668_s4 = inlined_call_operand.hbm [shape: f32[8,128], index: 4, kind: output, shape index: {}]  }
   0x1   :  { %10 = vsyncpa [#allocation6], 0 }
   0x2   :  { %11 = vsyncpa [#allocation4], 0  ;;  %s610_s15 = smov [#allocation2]   ;;  %s611_s17 = smov [#allocation5]  }
   0x3   :  { %s18_s16 = sshll.u32 %s610_s15, 4  ;;  %s29_s18 = sshll.u32 %s611_s17, 4  ;;  %s19_s16 = int_to_ptr.vmem [resolvable:$true] %s18_s16  ;;  %s30_s18 = int_to_ptr.vmem [resolvable:$true] %s29_s18 }
   0x4   :  { %s552_s19 = scalar_lea.vmem %s19_s16, 768  ;;  %p557_p1 = scmp.lt.s32.totalorder %s19_s16, %s19_s16 }
   0x5   :  { %p553_p0 = scmp.ne.s32.totalorder %s19_s16, %s552_s19  ;;  %p558_p2 = scmp.lt.s32.totalorder %s552_s19, %s552_s19 }
   0x7   :  { %p559_p3 = por %p558_p2, %p557_p1 }
   0x9   :  { %p560_p4 = pnand %p559_p3, %p553_p0 }
   0xb   :  { %563 = shalt.err (!%p560_p4)
}
   0xc   :  { %21 = dma.hbm_to_vmem [thread:$0]  %s664_s0, 768, %s19_s16, [#allocation3]  }
   0xd   :  { %s572_s22 = scalar_lea.vmem %s30_s18, 12288  ;;  %p577_p6 = scmp.lt.s32.totalorder %s30_s18, %s30_s18 }
   0xe   :  { %p573_p5 = scmp.ne.s32.totalorder %s30_s18, %s572_s22  ;;  %p578_p7 = scmp.lt.s32.totalorder %s572_s22, %s572_s22 }
  0x10   :  { %p579_p8 = por %p578_p7, %p577_p6 }
  0x12   :  { %p580_p9 = pnand %p579_p8, %p573_p5 }
  0x14   :  { %583 = shalt.err (!%p580_p9)
}
  0x15   :  { %s612_s23 = smov 128   ;;  %s613_s24 = smov 8  }
  0x16   :  { %35 = dma.hbm_to_vmem [thread:$0]  %s666_s2, 12288, %s30_s18, [#allocation6], %s612_s23, %s612_s23, %s613_s24  }
  0x17   :  { %604 = dma.done.wait [#allocation3], 768  }
  0x18   :  { %605 = vsyncadd [#allocation3], 4294966528 }
  0x19   :  { %606 = dma.done.wait [#allocation6], 12288  }
  0x1a   :  { %607 = vsyncadd [#allocation6], 4294955008  ;;  %v82_v0 = vld [vmem:[#allocation5 + $0xf8] sm:$0xff]  ;;  %v81_v4 = vld [vmem:[#allocation5 + $0xf0] sm:$0xff] }
  0x1b   :  { %v114_v1 = vld [vmem:[#allocation5 + $0x1f8] sm:$0xff]  ;;  %424 = vmatprep.subr.mxu0 %v82_v0  ;;  %v113_v5 = vld [vmem:[#allocation5 + $0x1f0] sm:$0xff]  ;;  %v80_v8 = vld [vmem:[#allocation5 + $0xe8] sm:$0xff] }
  0x1c   :  { %v66_v2 = vld [vmem:[#allocation5 + $0x78] sm:$0xff]  ;;  %459 = vmatprep.subr.mxu1 %v114_v1  ;;  %v65_v6 = vld [vmem:[#allocation5 + $0x70] sm:$0xff]  ;;  %v112_v9 = vld [vmem:[#allocation5 + $0x1e8] sm:$0xff] }
  0x1d   :  { %v98_v3 = vld [vmem:[#allocation5 + $0x178] sm:$0xff]  ;;  %425 = vmatpush3.msra.mxu0 %v66_v2  ;;  %v97_v7 = vld [vmem:[#allocation5 + $0x170] sm:$0xff]  ;;  %v64_v10 = vld [vmem:[#allocation5 + $0x68] sm:$0xff] }
  0x1e   :  { %460 = vmatpush3.msra.mxu1 %v98_v3  ;;  %426 = vmatprep.subr.mxu0 %v81_v4  ;;  %v96_v11 = vld [vmem:[#allocation5 + $0x168] sm:$0xff]  ;;  %v79_v12 = vld [vmem:[#allocation5 + $0xe0] sm:$0xff]  ;;  %v78_v16 = vld [vmem:[#allocation5 + $0xd8] sm:$0xff] }
  0x1f   :  { %461 = vmatprep.subr.mxu1 %v113_v5  ;;  %427 = vmatpush3.msra.mxu0 %v65_v6  ;;  %v111_v13 = vld [vmem:[#allocation5 + $0x1e0] sm:$0xff]  ;;  %v110_v17 = vld [vmem:[#allocation5 + $0x1d8] sm:$0xff]  ;;  %v77_v20 = vld [vmem:[#allocation5 + $0xd0] sm:$0xff] }
  0x20   :  { %462 = vmatpush3.msra.mxu1 %v97_v7  ;;  %428 = vmatprep.subr.mxu0 %v80_v8  ;;  %v63_v14 = vld [vmem:[#allocation5 + $0x60] sm:$0xff]  ;;  %v62_v18 = vld [vmem:[#allocation5 + $0x58] sm:$0xff]  ;;  %v109_v21 = vld [vmem:[#allocation5 + $0x1d0] sm:$0xff] }
  0x21   :  { %463 = vmatprep.subr.mxu1 %v112_v9  ;;  %v95_v15 = vld [vmem:[#allocation5 + $0x160] sm:$0xff]  ;;  %429 = vmatpush3.msra.mxu0 %v64_v10  ;;  %v94_v19 = vld [vmem:[#allocation5 + $0x158] sm:$0xff]  ;;  %v61_v22 = vld [vmem:[#allocation5 + $0x50] sm:$0xff] }
  0x22   :  { %464 = vmatpush3.msra.mxu1 %v96_v11  ;;  %430 = vmatprep.subr.mxu0 %v79_v12  ;;  %v93_v23 = vld [vmem:[#allocation5 + $0x150] sm:$0xff]  ;;  %v76_v24 = vld [vmem:[#allocation5 + $0xc8] sm:$0xff]  ;;  %v75_v28 = vld [vmem:[#allocation5 + $0xc0] sm:$0xff] }
  0x23   :  { %465 = vmatprep.subr.mxu1 %v111_v13  ;;  %431 = vmatpush3.msra.mxu0 %v63_v14  ;;  %v108_v25 = vld [vmem:[#allocation5 + $0x1c8] sm:$0xff]  ;;  %v107_v29 = vld [vmem:[#allocation5 + $0x1c0] sm:$0xff]  ;;  %v74_v32 = vld [vmem:[#allocation5 + $0xb8] sm:$0xff] }
  0x24   :  { %466 = vmatpush3.msra.mxu1 %v95_v15  ;;  %432 = vmatprep.subr.mxu0 %v78_v16  ;;  %v60_v26 = vld [vmem:[#allocation5 + $0x48] sm:$0xff]  ;;  %v59_v30 = vld [vmem:[#allocation5 + $0x40] sm:$0xff]  ;;  %v106_v33 = vld [vmem:[#allocation5 + $0x1b8] sm:$0xff] }
  0x25   :  { %467 = vmatprep.subr.mxu1 %v110_v17  ;;  %433 = vmatpush3.msra.mxu0 %v62_v18  ;;  %v92_v27 = vld [vmem:[#allocation5 + $0x148] sm:$0xff]  ;;  %v91_v31 = vld [vmem:[#allocation5 + $0x140] sm:$0xff]  ;;  %v58_v34 = vld [vmem:[#allocation5 + $0x38] sm:$0xff] }
  0x26   :  { %468 = vmatpush3.msra.mxu1 %v94_v19  ;;  %434 = vmatprep.subr.mxu0 %v77_v20  ;;  %v90_v35 = vld [vmem:[#allocation5 + $0x138] sm:$0xff]  ;;  %v73_v36 = vld [vmem:[#allocation5 + $0xb0] sm:$0xff]  ;;  %v72_v40 = vld [vmem:[#allocation5 + $0xa8] sm:$0xff] }
  0x27   :  { %469 = vmatprep.subr.mxu1 %v109_v21  ;;  %435 = vmatpush3.msra.mxu0 %v61_v22  ;;  %v105_v37 = vld [vmem:[#allocation5 + $0x1b0] sm:$0xff]  ;;  %v104_v41 = vld [vmem:[#allocation5 + $0x1a8] sm:$0xff]  ;;  %v71_v44 = vld [vmem:[#allocation5 + $0xa0] sm:$0xff] }
  0x28   :  { %470 = vmatpush3.msra.mxu1 %v93_v23  ;;  %436 = vmatprep.subr.mxu0 %v76_v24  ;;  %v57_v38 = vld [vmem:[#allocation5 + $0x30] sm:$0xff]  ;;  %v56_v42 = vld [vmem:[#allocation5 + $0x28] sm:$0xff]  ;;  %v103_v45 = vld [vmem:[#allocation5 + $0x1a0] sm:$0xff] }
  0x29   :  { %471 = vmatprep.subr.mxu1 %v108_v25  ;;  %437 = vmatpush3.msra.mxu0 %v60_v26  ;;  %v89_v39 = vld [vmem:[#allocation5 + $0x130] sm:$0xff]  ;;  %v88_v43 = vld [vmem:[#allocation5 + $0x128] sm:$0xff]  ;;  %v55_v46 = vld [vmem:[#allocation5 + $0x20] sm:$0xff] }
  0x2a   :  { %472 = vmatpush3.msra.mxu1 %v92_v27  ;;  %438 = vmatprep.subr.mxu0 %v75_v28  ;;  %v87_v47 = vld [vmem:[#allocation5 + $0x120] sm:$0xff]  ;;  %v45_v48 = vld [vmem:[#allocation2 + $0x8] sm:$0xff]  ;;  %v44_v52 = vld [vmem:[#allocation2] sm:$0xff] }
  0x2b   :  { %473 = vmatprep.subr.mxu1 %v107_v29  ;;  %439 = vmatpush3.msra.mxu0 %v59_v30  ;;  %v70_v49 = vld [vmem:[#allocation5 + $0x98] sm:$0xff]  ;;  %v149_v51 = vmul.f32 %v45_v48, %v45_v48  ;;  %v148_v55 = vmul.f32 %v44_v52, %v44_v52  ;;  %v46_v56 = vld [vmem:[#allocation2 + $0x10] sm:$0xff]  ;;  %v69_v57 = vld [vmem:[#allocation5 + $0x90] sm:$0xff] }
  0x2c   :  { %474 = vmatpush3.msra.mxu1 %v91_v31  ;;  %440 = vmatprep.subr.mxu0 %v74_v32  ;;  %v102_v50 = vld [vmem:[#allocation5 + $0x198] sm:$0xff]  ;;  %v101_v58 = vld [vmem:[#allocation5 + $0x190] sm:$0xff]  ;;  %v150_v59 = vmul.f32 %v46_v56, %v46_v56  ;;  %v68_v63 = vld [vmem:[#allocation5 + $0x88] sm:$0xff] }
  0x2d   :  { %475 = vmatprep.subr.mxu1 %v106_v33  ;;  %441 = vmatpush3.msra.mxu0 %v58_v34  ;;  %v54_v53 = vld [vmem:[#allocation5 + $0x18] sm:$0xff]  ;;  %v53_v60 = vld [vmem:[#allocation5 + $0x10] sm:$0xff]  ;;  %v154_v62 = vadd.f32 %v149_v51, %v148_v55  ;;  %v100_v0 = vld [vmem:[#allocation5 + $0x188] sm:$0xff] }
  0x2e   :  { %476 = vmatpush3.msra.mxu1 %v90_v35  ;;  %442 = vmatprep.subr.mxu0 %v73_v36  ;;  %v86_v54 = vld [vmem:[#allocation5 + $0x118] sm:$0xff]  ;;  %v85_v61 = vld [vmem:[#allocation5 + $0x110] sm:$0xff]  ;;  %v52_v1 = vld [vmem:[#allocation5 + $0x8] sm:$0xff] }
  0x2f   :  { %477 = vmatprep.subr.mxu1 %v105_v37  ;;  %443 = vmatpush3.msra.mxu0 %v57_v38  ;;  %v84_v2 = vld [vmem:[#allocation5 + $0x108] sm:$0xff]  ;;  %v67_v4 = vld [vmem:[#allocation5 + $0x80] sm:$0xff]  ;;  %v155_v7 = vadd.f32 %v154_v62, %v150_v59  ;;  %v146_v10 = vld [vmem:[#allocation5 + $0x2f8] sm:$0xff]  ;;  %v374_v59 = vlaneseq }
  0x30   :  { %478 = vmatpush3.msra.mxu1 %v89_v39  ;;  %444 = vmatprep.subr.mxu0 %v72_v40  ;;  %v47_v3 = vld [vmem:[#allocation2 + $0x18] sm:$0xff]  ;;  %v99_v5 = vld [vmem:[#allocation5 + $0x180] sm:$0xff]  ;;  %v130_v12 = vld [vmem:[#allocation5 + $0x278] sm:$0xff] }
  0x31   :  { %479 = vmatprep.subr.mxu1 %v104_v41  ;;  %445 = vmatpush3.msra.mxu0 %v56_v42  ;;  %v151_v6 = vmul.f32 %v47_v3, %v47_v3  ;;  %v51_v8 = vld [vmem:[#allocation5] sm:$0xff]  ;;  %v49_v13 = vld [vmem:[#allocation2 + $0x28] sm:$0xff]  ;;  %v648_v14 = vld [vmem:[#allocation2 + $0x20] sm:$0xff] }
  0x32   :  { %480 = vmatpush3.msra.mxu1 %v88_v43  ;;  %446 = vmatprep.subr.mxu0 %v71_v44  ;;  %v83_v9 = vld [vmem:[#allocation5 + $0x100] sm:$0xff]  ;;  %v145_v15 = vld [vmem:[#allocation5 + $0x2f0] sm:$0xff]  ;;  %v152_v16 = vmul.f32 %v648_v14, %v648_v14  ;;  %v153_v17 = vmul.f32 %v49_v13, %v49_v13  ;;  %v144_v19 = vld [vmem:[#allocation5 + $0x2e8] sm:$0xff] }
  0x33   :  { %481 = vmatprep.subr.mxu1 %v103_v45  ;;  %447 = vmatpush3.msra.mxu0 %v55_v46  ;;  %v156_v11 = vadd.f32 %v155_v7, %v151_v6  ;;  %v129_v18 = vld [vmem:[#allocation5 + $0x270] sm:$0xff]  ;;  %v128_v21 = vld [vmem:[#allocation5 + $0x268] sm:$0xff]  ;;  %v143_v22 = vld [vmem:[#allocation5 + $0x2e0] sm:$0xff]  ;;  %v614_v6 = vmov 0  }
  0x34   :  { %482 = vmatpush3.msra.mxu1 %v87_v47  ;;  %448 = vmatprep.subr.mxu0 %v70_v49  ;;  %v127_v24 = vld [vmem:[#allocation5 + $0x260] sm:$0xff]  ;;  %v142_v25 = vld [vmem:[#allocation5 + $0x2d8] sm:$0xff]  ;;  %v141_v27 = vld [vmem:[#allocation5 + $0x2d0] sm:$0xff] }
  0x35   :  { %483 = vmatprep.subr.mxu1 %v102_v50  ;;  %449 = vmatpush3.msra.mxu0 %v54_v53  ;;  %v157_v20 = vadd.f32 %v156_v11, %v152_v16  ;;  %v126_v26 = vld [vmem:[#allocation5 + $0x258] sm:$0xff]  ;;  %v125_v28 = vld [vmem:[#allocation5 + $0x250] sm:$0xff]  ;;  %v140_v29 = vld [vmem:[#allocation5 + $0x2c8] sm:$0xff] }
  0x36   :  { %484 = vmatpush3.msra.mxu1 %v86_v54  ;;  %450 = vmatprep.subr.mxu0 %v69_v57  ;;  %v124_v30 = vld [vmem:[#allocation5 + $0x248] sm:$0xff]  ;;  %v139_v31 = vld [vmem:[#allocation5 + $0x2c0] sm:$0xff]  ;;  %v138_v33 = vld [vmem:[#allocation5 + $0x2b8] sm:$0xff] }
  0x37   :  { %485 = vmatprep.subr.mxu1 %v101_v58  ;;  %451 = vmatpush3.msra.mxu0 %v53_v60  ;;  %v158_v23 = vadd.f32 %v157_v20, %v153_v17  ;;  %v123_v32 = vld [vmem:[#allocation5 + $0x240] sm:$0xff]  ;;  %v122_v34 = vld [vmem:[#allocation5 + $0x238] sm:$0xff]  ;;  %v137_v35 = vld [vmem:[#allocation5 + $0x2b0] sm:$0xff] }
  0x38   :  { %486 = vmatpush3.msra.mxu1 %v85_v61  ;;  %452 = vmatprep.subr.mxu0 %v68_v63  ;;  %v121_v36 = vld [vmem:[#allocation5 + $0x230] sm:$0xff]  ;;  %v136_v37 = vld [vmem:[#allocation5 + $0x2a8] sm:$0xff]  ;;  %v135_v39 = vld [vmem:[#allocation5 + $0x2a0] sm:$0xff] }
  0x39   :  { %487 = vmatprep.subr.mxu1 %v100_v0  ;;  %453 = vmatpush3.msra.mxu0 %v52_v1  ;;  %v120_v38 = vld [vmem:[#allocation5 + $0x228] sm:$0xff]  ;;  %v119_v40 = vld [vmem:[#allocation5 + $0x220] sm:$0xff]  ;;  %v134_v41 = vld [vmem:[#allocation5 + $0x298] sm:$0xff]  ;;  %v375_v0 = vand.u32 127, %v374_v59 }
  0x3a   :  { %488 = vmatpush3.msra.mxu1 %v84_v2  ;;  %454 = vmatprep.subr.mxu0 %v67_v4  ;;  %v118_v42 = vld [vmem:[#allocation5 + $0x218] sm:$0xff]  ;;  %v133_v43 = vld [vmem:[#allocation5 + $0x290] sm:$0xff]  ;;  %v132_v45 = vld [vmem:[#allocation5 + $0x288] sm:$0xff] }
  0x3b   :  { %489 = vmatprep.subr.mxu1 %v99_v5  ;;  %455 = vmatpush3.msra.mxu0 %v51_v8  ;;  %v117_v44 = vld [vmem:[#allocation5 + $0x210] sm:$0xff]  ;;  %v116_v46 = vld [vmem:[#allocation5 + $0x208] sm:$0xff]  ;;  %v131_v47 = vld [vmem:[#allocation5 + $0x280] sm:$0xff]  ;;  %vm376_vm0 = vcmp.lt.s32.totalorder %v375_v0, 40 }
  0x3c   :  { %225 = vmatprep.mubr.f32.mxu0 %v45_v48  ;;  %490 = vmatpush3.msra.mxu1 %v83_v9  ;;  %v115_v48 = vld [vmem:[#allocation5 + $0x200] sm:$0xff]  ;;  %v423_v2 = vld [vmem:[%s667_s3] ss:$0 sm:$0xff]  ;;  %s616_s3 = smov [#allocation7]  }
  0x3d   :  { %295 = vmatprep.mubr.f32.mxu1 %v47_v3  ;;  %226 = vmatmul.mubr.f32.vlgmr.msra.gmra.mxu0 %v44_v52  ;;  %v50_v11 = vld [vmem:[%s665_s1] sm:$0xff]  ;;  %s413_s29 = sshll.u32 %s616_s3, 4  ;;  %s414_s29 = int_to_ptr.vmem [resolvable:$true] %s413_s29 }
  0x3e   :  { %296 = vmatmul.mubr.f32.vlgmr.msra.gmra.mxu1 %v46_v56  ;;  %494 = vmatprep.subr.mxu0 %v146_v10  ;;  %s584_s1 = scalar_lea.vmem %s414_s29, 128  ;;  %p589_p11 = scmp.lt.s32.totalorder %s414_s29, %s414_s29 }
  0x3f   :  { %365 = vmatprep.mubr.f32.mxu0 %v49_v13  ;;  %495 = vmatpush3.msra.mxu0 %v130_v12  ;;  %p585_p10 = scmp.ne.s32.totalorder %s414_s29, %s584_s1  ;;  %p590_p12 = scmp.lt.s32.totalorder %s584_s1, %s584_s1 }
  0x40   :  { %496 = vmatprep.subr.mxu0 %v145_v15  ;;  %159 = vadd.xlane.f32.xlu0 %v158_v23 }
  0x41   :  { %497 = vmatpush3.msra.mxu0 %v129_v18  ;;  %536 = vset.pattern.permute.xlu1 %v614_v6  ;;  %p591_p13 = por %p590_p12, %p589_p11 }
  0x42   :  { %498 = vmatprep.subr.mxu0 %v144_v19  ;;  %537 = vset.pattern.permute.xlu0 %v614_v6 }
  0x43   :  { %499 = vmatpush3.msra.mxu0 %v128_v21  ;;  %p592_p0 = pnand %p591_p13, %p585_p10 }
  0x44   :  { %500 = vmatprep.subr.mxu0 %v143_v22 }
  0x45   :  { %501 = vmatpush3.msra.mxu0 %v127_v24 }
  0x46   :  { %502 = vmatprep.subr.mxu0 %v142_v25 }
  0x47   :  { %503 = vmatpush3.msra.mxu0 %v126_v26 }
  0x48   :  { %504 = vmatprep.subr.mxu0 %v141_v27 }
  0x49   :  { %505 = vmatpush3.msra.mxu0 %v125_v28 }
  0x4a   :  { %506 = vmatprep.subr.mxu0 %v140_v29 }
  0x4b   :  { %507 = vmatpush3.msra.mxu0 %v124_v30 }
  0x4c   :  { %508 = vmatprep.subr.mxu0 %v139_v31 }
  0x4d   :  { %509 = vmatpush3.msra.mxu0 %v123_v32 }
  0x4e   :  { %510 = vmatprep.subr.mxu0 %v138_v33 }
  0x4f   :  { %511 = vmatpush3.msra.mxu0 %v122_v34 }
  0x50   :  { %512 = vmatprep.subr.mxu0 %v137_v35 }
  0x51   :  { %513 = vmatpush3.msra.mxu0 %v121_v36 }
  0x52   :  { %514 = vmatprep.subr.mxu0 %v136_v37 }
  0x53   :  { %515 = vmatpush3.msra.mxu0 %v120_v38 }
  0x54   :  { %516 = vmatprep.subr.mxu0 %v135_v39 }
  0x55   :  { %517 = vmatpush3.msra.mxu0 %v119_v40 }
  0x56   :  { %518 = vmatprep.subr.mxu0 %v134_v41 }
  0x57   :  { %519 = vmatpush3.msra.mxu0 %v118_v42 }
  0x58   :  { %520 = vmatprep.subr.mxu0 %v133_v43 }
  0x59   :  { %521 = vmatpush3.msra.mxu0 %v117_v44 }
  0x5a   :  { %522 = vmatprep.subr.mxu0 %v132_v45 }
  0x5b   :  { %523 = vmatpush3.msra.mxu0 %v116_v46 }
  0x5c   :  { %524 = vmatprep.subr.mxu0 %v131_v47 }
  0x5d   :  { %525 = vmatpush3.msra.mxu0 %v115_v48 }
  0x5e   :  { %366 = vmatmul.mubr.f32.vlgmr.msra.gmra.mxu0 %v648_v14  ;;  %v615_v14 = vmov 0.0025641026  }
  0xc9   :  { %v160_v49 = vpop.xlane.xlu0 %159 }
  0xca   :  { %v371_v50 = vmax.f32 %v160_v49, 1e-24 }
  0xcc   :  { %538 = vrsqrt.f32 %v371_v50 }
  0xd9   :  { %v539_v57 = vpop.eup %538 }
  0xda   :  { %v373_v62 = vmul.f32 2.0, %v539_v57 }
  0xfd   :  { %v456_v51 = vpop.f32.mrf.mxu0 }
  0xfe   :  { %v491_v52 = vpop.f32.mrf.mxu1 }
  0xff   :  { %v457_v53 = vpop.f32.mrf.mxu0 }
 0x100   :  { %v492_v54 = vpop.f32.mrf.mxu1  ;;  %v458_v55 = vadd.f32 %v457_v53, %v456_v51 }
 0x101   :  { %v493_v56 = vadd.f32 %v492_v54, %v491_v52 }
 0x103   :  { %v298_v61 = vadd.f32 %v493_v56, %v458_v55 }
 0x11e   :  { %v526_v58 = vpop.f32.mrf.mxu0 }
 0x120   :  { %v527_v60 = vpop.f32.mrf.mxu0 }
 0x121   :  { %v528_v63 = vadd.f32 %v527_v60, %v526_v58 }
 0x123   :  { %v368_v1 = vadd.f32 %v528_v63, %v298_v61 }
 0x125   :  { %v377_v3 = vmul.f32 %v373_v62, %v368_v1 }
 0x127   :  { %v384_v4 = vsub.f32 %v377_v3, %v423_v2 }
 0x129   :  { %v385_v5 = vsel %vm376_vm0, %v384_v4, -1e+30 }
 0x12a   :  { %386 = vmax.xlane.f32.xlu0 %v385_v5 }
 0x1b3   :  { %v387_v7 = vpop.xlane.xlu0 %386 }
 0x1b4   :  { %v388_v8 = vsub.f32 %v385_v5, %v387_v7 }
 0x1b6   :  { %v389_v9 = vmul.f32 1.442695, %v388_v8 }
 0x1b8   :  { %540 = vpow2.f32 %v389_v9 }
 0x1c5   :  { %v541_v10 = vpop.eup %540 }
 0x1c6   :  { %391 = vadd.xlane.f32.xlu1 %v541_v10 }
 0x1d7   :  { %398 = vperm.xlu1 %536, %v50_v11  }
 0x24f   :  { %v392_v12 = vpop.xlane.xlu1 %391 }
 0x250   :  { %542 = vlog2.f32 %v392_v12 }
 0x253   :  { %v399_v13 = vpop.permute.xlu1 %398 }
 0x254   :  { %vm400_vm1 = vcmp.eq.s32.totalorder %v375_v0, %v399_v13 }
 0x255   :  { %v401_v15 = vsel %vm400_vm1, 0.9, %v615_v14 }
 0x256   :  { %v402_v17 = vsel %vm376_vm0, %v401_v15, 0.0 }
 0x257   :  { %v403_v20 = vsub.f32 0.0, %v402_v17 }
 0x25d   :  { %v543_v16 = vpop.eup %542 }
 0x25e   :  { %v394_v18 = vmul.f32 0.6931472, %v543_v16 }
 0x260   :  { %v395_v19 = vadd.f32 %v394_v18, %v387_v7 }
 0x262   :  { %v396_v21 = vsub.f32 %v385_v5, %v395_v19 }
 0x264   :  { %v404_v22 = vmul.f32 %v403_v20, %v396_v21 }
 0x266   :  { %406 = vst [vmem:[#allocation7] sm:$0xff] %v404_v22 }
 0x267   :  { %595 = shalt.err (!%p592_p0)
}
 0x268   :  { %416 = dma.vmem_to_hbm [thread:$0]  %s414_s29, 128, %s668_s4, [#allocation4]  }
 0x269   :  { %608 = dma.done.wait [#allocation4], 128  }
 0x26a   :  { %609 = vsyncadd [#allocation4], 4294967168 }
 0x26b   :  { %420 = vsyncpa [#allocation3], 1 }
 0x26c   :  { %421 = vsyncpa [#allocation6], 1 }
 0x26d   :  { %422 = vsyncpa [#allocation4], 1 }

</bundles_post_ra>
